<compile_context>
chip_gen: v7x
topology: tpu7x:2x2x1
jax: 0.10.0
libtpu: 0.0.40
codegen_flags: <defaults>
</compile_context>

<pallas_src>
import functools

import jax
import jax.numpy as jnp
from jax.experimental import pallas as pl
from jax.experimental.pallas import tpu as pltpu

LANE = 128
_EPS = 1e-5
_FUSED_MAX_NODES = 512          # <= one row tile -> use the fully fused kernel


def _round_up(x, m):
    return (x + m - 1) // m * m


def _pad_to(a, rows, cols, dtype):
    out = jnp.zeros((rows, cols), dtype)
    return out.at[: a.shape[0], : a.shape[1]].set(a.astype(dtype))


@functools.lru_cache(maxsize=None)
def _vmem_limit_bytes():
    # Generation-aware: ~96 MiB on 128-MiB parts (v5e/v6e), ~48 MiB on v7x (64 MiB).
    try:
        cap = int(pltpu.get_tpu_info().vmem_capacity_bytes)
    except Exception:
        cap = 64 * 1024 * 1024            # conservative fallback (v7x-sized)
    return min(cap * 3 // 4, 100 * 1024 * 1024)


def _compiler_params(with_grid):
    if with_grid:
        return pltpu.CompilerParams(
            dimension_semantics=("parallel", "arbitrary"),
            vmem_limit_bytes=_vmem_limit_bytes())
    return pltpu.CompilerParams(vmem_limit_bytes=_vmem_limit_bytes())


# ---------------------------------------------------------------------------
# Shared in-kernel math (traced inside the kernels)
# ---------------------------------------------------------------------------
def _masked_layernorm(h, gamma, beta, hidden_dim):
    # LayerNorm over the real hidden_dim lanes only.  Relies on: padded lanes
    # of h being exactly 0 (zero-padded weights/bias + ReLU) and gamma/beta
    # being zero-padded, so padded lanes stay exactly 0 afterwards.
    inv_h = 1.0 / hidden_dim
    mu = jnp.sum(h, axis=-1, keepdims=True) * inv_h
    lane = jax.lax.broadcasted_iota(jnp.int32, h.shape, 1)
    mask = (lane < hidden_dim).astype(jnp.float32)
    d = (h - mu) * mask
    var = jnp.sum(d * d, axis=-1, keepdims=True) * inv_h
    return d * jax.lax.rsqrt(var + _EPS) * gamma + beta


def _masked_log_softmax(z, out_dim):
    col = jax.lax.broadcasted_iota(jnp.int32, z.shape, 1)
    z = jnp.where(col < out_dim, z, -1e30)     # mask padded logit lanes
    m = jnp.max(z, axis=-1, keepdims=True)
    zs = z - m
    lse = jnp.log(jnp.sum(jnp.exp(zs), axis=-1, keepdims=True))
    return zs - lse


# ---------------------------------------------------------------------------
# Fully fused single-block kernel (small graphs, grid-less pallas_call)
# ---------------------------------------------------------------------------
def _fused_gnn_kernel(a_ref, x_ref, idg_ref,
                      wl0_ref, wr0_ref, b0_ref, g0_ref, be0_ref,
                      wl1_ref, wr1_ref, b1_ref, g1_ref, be1_ref,
                      wl2_ref, wr2_ref, b2_ref,
                      wp1_ref, bp1_ref, wp2_ref, bp2_ref,
                      emb_ref, logp_ref, *, hidden_dim, out_dim):
    a = a_ref[...].astype(jnp.bfloat16)        # int8 0/1 counts -> bf16 for MXU
    idg = idg_ref[...]                         # f32 1/deg, (n, 1)

    def sage(h, wl, wr, b):
        agg = jnp.dot(a, h, preferred_element_type=jnp.float32) * idg   # mean aggr
        z = (jnp.dot(agg.astype(jnp.bfloat16), wl[...],
                     preferred_element_type=jnp.float32)
             + jnp.dot(h, wr[...], preferred_element_type=jnp.float32)
             + b[...])
        return jnp.maximum(z, 0.0)             # padded lanes stay exactly 0

    # F.dropout (p=0.25 / 0.5) -> identity in eval mode
    h1 = _masked_layernorm(sage(x_ref[...], wl0_ref, wr0_ref, b0_ref),
                           g0_ref[...], be0_ref[...],
                           hidden_dim).astype(jnp.bfloat16)
    h2 = _masked_layernorm(sage(h1, wl1_ref, wr1_ref, b1_ref),
                           g1_ref[...], be1_ref[...],
                           hidden_dim).astype(jnp.bfloat16)
    h3 = sage(h2, wl2_ref, wr2_ref, b2_ref)    # conv2 output (emb), f32
    emb_ref[...] = h3.astype(emb_ref.dtype)

    z1 = jnp.maximum(
        jnp.dot(h3.astype(jnp.bfloat16), wp1_ref[...],
                preferred_element_type=jnp.float32) + bp1_ref[...], 0.0)
    z2 = jnp.dot(z1.astype(jnp.bfloat16), wp2_ref[...],
                 preferred_element_type=jnp.float32) + bp2_ref[...]
    logp_ref[...] = _masked_log_softmax(z2, out_dim)


# ---------------------------------------------------------------------------
# Tiled streaming kernels (large graphs)
# ---------------------------------------------------------------------------
def _sage_ln_kernel(a_ref, hk_ref, hs_ref, idg_ref, wl_ref, wr_ref, b_ref,
                    g_ref, be_ref, out_ref, acc_ref,
                    *, hidden_dim, tk, resident_h):
    """One SAGEConv (mean aggr) + bias + ReLU + LayerNorm over a (row, K) grid."""
    k = pl.program_id(1)

    @pl.when(k == 0)
    def _():
        acc_ref[...] = jnp.zeros_like(acc_ref)

    if resident_h:     # h fully VMEM-resident (constant index_map); slice K rows
        hk = hk_ref[pl.ds(pl.multiple_of(k * tk, tk), tk), :]
    else:              # fallback: h streamed per K tile
        hk = hk_ref[...]
    # acc[i, :] += sum_j A[i, j] * h[j, :]   (A is int8 0/1 counts)
    acc_ref[...] += jnp.dot(a_ref[...].astype(jnp.bfloat16), hk,
                            preferred_element_type=jnp.float32)

    @pl.when(k == pl.num_programs(1) - 1)
    def _():
        agg = (acc_ref[...] * idg_ref[...]).astype(jnp.bfloat16)   # exact f32 1/deg
        z = (jnp.dot(agg, wl_ref[...], preferred_element_type=jnp.float32)
             + jnp.dot(hs_ref[...], wr_ref[...], preferred_element_type=jnp.float32)
             + b_ref[...])
        h = jnp.maximum(z, 0.0)
        out_ref[...] = _masked_layernorm(h, g_ref[...], be_ref[...],
                                         hidden_dim).astype(out_ref.dtype)
        # F.dropout(p=0.25) -> identity in eval mode


def _sage_head_kernel(a_ref, hk_ref, hs_ref, idg_ref, wl_ref, wr_ref, b_ref,
                      wp1_ref, bp1_ref, wp2_ref, bp2_ref,
                      emb_ref, logp_ref, acc_ref, *, out_dim, tk, resident_h):
    """Last SAGEConv (ReLU, no LN) fused with the MLP head + log_softmax."""
    k = pl.program_id(1)

    @pl.when(k == 0)
    def _():
        acc_ref[...] = jnp.zeros_like(acc_ref)

    if resident_h:
        hk = hk_ref[pl.ds(pl.multiple_of(k * tk, tk), tk), :]
    else:
        hk = hk_ref[...]
    acc_ref[...] += jnp.dot(a_ref[...].astype(jnp.bfloat16), hk,
                            preferred_element_type=jnp.float32)

    @pl.when(k == pl.num_programs(1) - 1)
    def _():
        agg = (acc_ref[...] * idg_ref[...]).astype(jnp.bfloat16)
        z = (jnp.dot(agg, wl_ref[...], preferred_element_type=jnp.float32)
             + jnp.dot(hs_ref[...], wr_ref[...], preferred_element_type=jnp.float32)
             + b_ref[...])
        h = jnp.maximum(z, 0.0)                  # conv2 output (emb)
        emb_ref[...] = h.astype(emb_ref.dtype)
        # post-message-passing MLP head (F.dropout(p=0.5) -> identity in eval)
        z1 = jnp.maximum(
            jnp.dot(h.astype(jnp.bfloat16), wp1_ref[...],
                    preferred_element_type=jnp.float32) + bp1_ref[...], 0.0)
        z2 = jnp.dot(z1.astype(jnp.bfloat16), wp2_ref[...],
                     preferred_element_type=jnp.float32) + bp2_ref[...]
        logp_ref[...] = _masked_log_softmax(z2, out_dim)


# ---------------------------------------------------------------------------
# Per-layer pallas_call wrappers (tiled path)
# ---------------------------------------------------------------------------
def _hk_spec(resident_h, n_pad, d_pad, tk):
    if resident_h:
        return pl.BlockSpec((n_pad, d_pad), lambda i, k: (0, 0))
    return pl.BlockSpec((tk, d_pad), lambda i, k: (k, 0))


def _sage_ln_layer(a_pad, h_in, idg, wl, wr, b, g, be, *,
                   hidden_dim, tm, tk, resident_h):
    n_pad = a_pad.shape[0]
    d_pad = h_in.shape[1]
    h_out = wl.shape[1]
    kernel = functools.partial(_sage_ln_kernel, hidden_dim=hidden_dim,
                               tk=tk, resident_h=resident_h)
    return pl.pallas_call(
        kernel,
        out_shape=jax.ShapeDtypeStruct((n_pad, h_out), jnp.bfloat16),
        grid_spec=pltpu.PrefetchScalarGridSpec(
            num_scalar_prefetch=0,
            grid=(n_pad // tm, n_pad // tk),
            in_specs=[
                pl.BlockSpec((tm, tk), lambda i, k: (i, k)),        # A tile (int8)
                _hk_spec(resident_h, n_pad, d_pad, tk),             # h (agg rows)
                pl.BlockSpec((tm, d_pad), lambda i, k: (i, 0)),     # h (self rows)
                pl.BlockSpec((tm, 1), lambda i, k: (i, 0)),         # 1/deg
                pl.BlockSpec((d_pad, h_out), lambda i, k: (0, 0)),  # W_l
                pl.BlockSpec((d_pad, h_out), lambda i, k: (0, 0)),  # W_r
                pl.BlockSpec((1, h_out), lambda i, k: (0, 0)),      # bias
                pl.BlockSpec((1, h_out), lambda i, k: (0, 0)),      # gamma
                pl.BlockSpec((1, h_out), lambda i, k: (0, 0)),      # beta
            ],
            out_specs=pl.BlockSpec((tm, h_out), lambda i, k: (i, 0)),
            scratch_shapes=[pltpu.VMEM((tm, d_pad), jnp.float32)],
        ),
        compiler_params=_compiler_params(with_grid=True),
    )(a_pad, h_in, h_in, idg, wl, wr, b, g, be)


def _sage_head_layer(a_pad, h_in, idg, wl, wr, b, wp1, bp1, wp2, bp2, *,
                     out_dim, tm, tk, resident_h):
    n_pad = a_pad.shape[0]
    d_pad = h_in.shape[1]
    h_out = wl.shape[1]
    m_pad = wp1.shape[1]
    o_pad = wp2.shape[1]
    kernel = functools.partial(_sage_head_kernel, out_dim=out_dim,
                               tk=tk, resident_h=resident_h)
    return pl.pallas_call(
        kernel,
        out_shape=(jax.ShapeDtypeStruct((n_pad, h_out), jnp.bfloat16),
                   jax.ShapeDtypeStruct((n_pad, o_pad), jnp.float32)),
        grid_spec=pltpu.PrefetchScalarGridSpec(
            num_scalar_prefetch=0,
            grid=(n_pad // tm, n_pad // tk),
            in_specs=[
                pl.BlockSpec((tm, tk), lambda i, k: (i, k)),
                _hk_spec(resident_h, n_pad, d_pad, tk),
                pl.BlockSpec((tm, d_pad), lambda i, k: (i, 0)),
                pl.BlockSpec((tm, 1), lambda i, k: (i, 0)),
                pl.BlockSpec((d_pad, h_out), lambda i, k: (0, 0)),
                pl.BlockSpec((d_pad, h_out), lambda i, k: (0, 0)),
                pl.BlockSpec((1, h_out), lambda i, k: (0, 0)),
                pl.BlockSpec((h_out, m_pad), lambda i, k: (0, 0)),
                pl.BlockSpec((1, m_pad), lambda i, k: (0, 0)),
                pl.BlockSpec((m_pad, o_pad), lambda i, k: (0, 0)),
                pl.BlockSpec((1, o_pad), lambda i, k: (0, 0)),
            ],
            out_specs=[
                pl.BlockSpec((tm, h_out), lambda i, k: (i, 0)),
                pl.BlockSpec((tm, o_pad), lambda i, k: (i, 0)),
            ],
            scratch_shapes=[pltpu.VMEM((tm, d_pad), jnp.float32)],
        ),
        compiler_params=_compiler_params(with_grid=True),
    )(a_pad, h_in, h_in, idg, wl, wr, b, wp1, bp1, wp2, bp2)


def _pick_tiles(n_pad128):
    # K tile chosen to minimise padded rows (ties -> larger tile = bigger DMAs);
    # row tile is the largest of {512,256,128} that divides the padded size
    # while keeping >= 2 row tiles (so "parallel" can use both v7x TensorCores).
    best = None
    for tk in (256, 512, 1024, 2048):
        n_pad = _round_up(n_pad128, tk)
        key = (n_pad, -tk)
        if best is None or key < best[0]:
            best = (key, tk, n_pad)
    _, tk, n_pad = best
    tm = 128
    for cand in (512, 256, 128):
        if n_pad % cand == 0 and n_pad // cand >= 2:
            tm = cand
            break
    return tm, tk, n_pad


# ---------------------------------------------------------------------------
# Full forward pass
# ---------------------------------------------------------------------------
@jax.jit
def gnn_stack_forward(x, adj_counts, inv_deg, params):
    """adj_counts[i, j] = #edges j->i (int-valued), inv_deg[i] = 1/max(deg_in,1)."""
    n, d_in = x.shape
    hidden = params["wl0"].shape[1]
    mlp_dim = params["wp1"].shape[1]
    out_dim = params["wp2"].shape[1]

    d_padw = _round_up(d_in, LANE)
    h_padw = _round_up(hidden, LANE)
    m_padw = _round_up(mlp_dim, LANE)
    o_padw = _round_up(out_dim, LANE)

    # Zero-padded, lane-dense parameters (bf16 MXU operands, f32 bias/LN).
    wl0 = _pad_to(params["wl0"], d_padw, h_padw, jnp.bfloat16)
    wr0 = _pad_to(params["wr0"], d_padw, h_padw, jnp.bfloat16)
    wl1 = _pad_to(params["wl1"], h_padw, h_padw, jnp.bfloat16)
    wr1 = _pad_to(params["wr1"], h_padw, h_padw, jnp.bfloat16)
    wl2 = _pad_to(params["wl2"], h_padw, h_padw, jnp.bfloat16)
    wr2 = _pad_to(params["wr2"], h_padw, h_padw, jnp.bfloat16)
    b0 = _pad_to(params["bl0"], 1, h_padw, jnp.float32)
    b1 = _pad_to(params["bl1"], 1, h_padw, jnp.float32)
    b2 = _pad_to(params["bl2"], 1, h_padw, jnp.float32)
    g0 = _pad_to(params["g0"], 1, h_padw, jnp.float32)
    be0 = _pad_to(params["be0"], 1, h_padw, jnp.float32)
    g1 = _pad_to(params["g1"], 1, h_padw, jnp.float32)
    be1 = _pad_to(params["be1"], 1, h_padw, jnp.float32)
    wp1 = _pad_to(params["wp1"], h_padw, m_padw, jnp.bfloat16)
    bp1 = _pad_to(params["bp1"], 1, m_padw, jnp.float32)
    wp2 = _pad_to(params["wp2"], m_padw, o_padw, jnp.bfloat16)
    bp2 = _pad_to(params["bp2"], 1, o_padw, jnp.float32)

    if n <= _FUSED_MAX_NODES:
        # ---- fully fused single-block path --------------------------------
        # Only the lane (last) axis must be 128-padded; rows only need int8
        # sublane packing (32), so N=16 pads to 32 rows instead of 128.
        n_pad = _round_up(max(n, 32), 32)
        a_pad = _pad_to(adj_counts, n_pad, n_pad, jnp.int8)
        x_pad = _pad_to(x, n_pad, d_padw, jnp.bfloat16)
        idg_pad = _pad_to(inv_deg.reshape(-1, 1), n_pad, 1, jnp.float32)
        kernel = functools.partial(_fused_gnn_kernel,
                                   hidden_dim=hidden, out_dim=out_dim)
        emb_pad, logp_pad = pl.pallas_call(
            kernel,
            out_shape=(jax.ShapeDtypeStruct((n_pad, h_padw), jnp.bfloat16),
                       jax.ShapeDtypeStruct((n_pad, o_padw), jnp.float32)),
            compiler_params=_compiler_params(with_grid=False),
        )(a_pad, x_pad, idg_pad,
          wl0, wr0, b0, g0, be0,
          wl1, wr1, b1, g1, be1,
          wl2, wr2, b2,
          wp1, bp1, wp2, bp2)
        return emb_pad[:n, :hidden], logp_pad[:n, :out_dim]

    # ---- tiled streaming path (large graphs) ------------------------------
    tm, tk, n_pad = _pick_tiles(_round_up(n, LANE))
    a_pad = _pad_to(adj_counts, n_pad, n_pad, jnp.int8)
    x_pad = _pad_to(x, n_pad, d_padw, jnp.bfloat16)
    idg_pad = _pad_to(inv_deg.reshape(-1, 1), n_pad, 1, jnp.float32)
    # Keep h fully VMEM-resident unless it would blow the per-core budget
    # (dense A itself becomes infeasible long before this triggers).
    resident_h = n_pad * max(d_padw, h_padw) * 2 * 2 <= 24 * 1024 * 1024

    h1 = _sage_ln_layer(a_pad, x_pad, idg_pad, wl0, wr0, b0, g0, be0,
                        hidden_dim=hidden, tm=tm, tk=tk, resident_h=resident_h)
    h2 = _sage_ln_layer(a_pad, h1, idg_pad, wl1, wr1, b1, g1, be1,
                        hidden_dim=hidden, tm=tm, tk=tk, resident_h=resident_h)
    emb_pad, logp_pad = _sage_head_layer(
        a_pad, h2, idg_pad, wl2, wr2, b2, wp1, bp1, wp2, bp2,
        out_dim=out_dim, tm=tm, tk=tk, resident_h=resident_h)
    return emb_pad[:n, :hidden], logp_pad[:n, :out_dim]


# ---------------------------------------------------------------------------
# Plain-JAX glue, params, reference
# ---------------------------------------------------------------------------
def build_adjacency(edge_index, num_nodes):
    # counts[i, j] = #edges j -> i ; SAGEConv mean aggr = (counts @ h) / deg_in(i)
    src, dst = edge_index[0], edge_index[1]
    ones = jnp.ones(src.shape[0], jnp.float32)
    counts = jnp.zeros((num_nodes, num_nodes), jnp.float32).at[dst, src].add(ones)
    deg = jnp.sum(counts, axis=1)
    inv_deg = 1.0 / jnp.maximum(deg, 1.0)
    return counts, inv_deg


def init_params(key, input_dim, hidden_dim, output_dim):
    ks = jax.random.split(key, 12)
    s = 0.1
    return {
        # SAGEConv: lin_l (bias), lin_r (no bias); weights stored [in, out]
        "wl0": jax.random.normal(ks[0], (input_dim, hidden_dim), jnp.float32) * s,
        "bl0": jax.random.normal(ks[1], (1, hidden_dim), jnp.float32) * s,
        "wr0": jax.random.normal(ks[2], (input_dim, hidden_dim), jnp.float32) * s,
        "wl1": jax.random.normal(ks[3], (hidden_dim, hidden_dim), jnp.float32) * s,
        "bl1": jax.random.normal(ks[4], (1, hidden_dim), jnp.float32) * s,
        "wr1": jax.random.normal(ks[5], (hidden_dim, hidden_dim), jnp.float32) * s,
        "wl2": jax.random.normal(ks[6], (hidden_dim, hidden_dim), jnp.float32) * s,
        "bl2": jax.random.normal(ks[7], (1, hidden_dim), jnp.float32) * s,
        "wr2": jax.random.normal(ks[8], (hidden_dim, hidden_dim), jnp.float32) * s,
        "g0": jnp.ones((1, hidden_dim), jnp.float32),
        "be0": jnp.zeros((1, hidden_dim), jnp.float32),
        "g1": jnp.ones((1, hidden_dim), jnp.float32),
        "be1": jnp.zeros((1, hidden_dim), jnp.float32),
        "wp1": jax.random.normal(ks[9], (hidden_dim, 50), jnp.float32) * s,
        "bp1": jnp.zeros((1, 50), jnp.float32),
        "wp2": jax.random.normal(ks[10], (50, output_dim), jnp.float32) * s,
        "bp2": jnp.zeros((1, output_dim), jnp.float32),
    }


def _layernorm(h, gamma, beta, eps=_EPS):
    mu = jnp.mean(h, axis=-1, keepdims=True)
    var = jnp.mean((h - mu) ** 2, axis=-1, keepdims=True)
    return (h - mu) * jax.lax.rsqrt(var + eps) * gamma + beta


def reference_forward(x, adj_norm, p):
    def sage(h, wl, bl, wr):
        return adj_norm @ h @ wl + bl + h @ wr

    h = jnp.maximum(sage(x, p["wl0"], p["bl0"], p["wr0"]), 0.0)
    h = _layernorm(h, p["g0"], p["be0"])
    h = jnp.maximum(sage(h, p["wl1"], p["bl1"], p["wr1"]), 0.0)
    h = _layernorm(h, p["g1"], p["be1"])
    h = jnp.maximum(sage(h, p["wl2"], p["bl2"], p["wr2"]), 0.0)
    emb = h
    z = jnp.maximum(h @ p["wp1"] + p["bp1"], 0.0)
    z = z @ p["wp2"] + p["bp2"]
    return emb, jax.nn.log_softmax(z, axis=1)


if __name__ == "__main__":
    INPUT_DIM, HIDDEN_DIM, OUTPUT_DIM = 8, 32, 7
    key = jax.random.PRNGKey(0)
    k_p, k_x1, k_x2, k_e = jax.random.split(key, 4)
    params = init_params(k_p, INPUT_DIM, HIDDEN_DIM, OUTPUT_DIM)

    def run_case(n_nodes, edge_index, kx):
        x = jax.random.normal(kx, (n_nodes, INPUT_DIM), jnp.float32)
        counts, inv_deg = build_adjacency(edge_index, n_nodes)
        emb, logp = gnn_stack_forward(x, counts, inv_deg, params)
        jax.block_until_ready((emb, logp))
        emb_ref, logp_ref = reference_forward(x, counts * inv_deg[:, None], params)
        assert emb.shape == (n_nodes, HIDDEN_DIM)
        assert logp.shape == (n_nodes, OUTPUT_DIM)
        # bf16 MXU operands (f32 accumulation) -> looser tolerance than pure f32
        assert jnp.allclose(emb, emb_ref, atol=5e-2, rtol=5e-2), \
            float(jnp.max(jnp.abs(emb - emb_ref)))
        assert jnp.allclose(logp, logp_ref, atol=5e-2, rtol=5e-2), \
            float(jnp.max(jnp.abs(logp - logp_ref)))

    # Case 1: tiny graph (N=16, directed ring both ways) -> fused single-call path
    N1 = 16
    idx = jnp.arange(N1, dtype=jnp.int32)
    edge_index1 = jnp.stack([jnp.concatenate([idx, (idx + 1) % N1]),
                             jnp.concatenate([(idx + 1) % N1, idx])])   # [2, 2N]
    run_case(N1, edge_index1, k_x1)

    # Case 2: medium random graph (N=600) -> tiled path (int8 A, resident h)
    N2, E2 = 600, 4800
    ks, kd = jax.random.split(k_e)
    edge_index2 = jnp.stack([jax.random.randint(ks, (E2,), 0, N2, dtype=jnp.int32),
                             jax.random.randint(kd, (E2,), 0, N2, dtype=jnp.int32)])
    run_case(N2, edge_index2, k_x2)

    print("KERNEL_OK")
</pallas_src>

<mosaic_0001>
module attributes {stable_mosaic.version = 11 : i64} {
  func.func @_fused_gnn_kernel(%arg0: memref<32x32xi8, #tpu.memory_space<vmem>>, %arg1: memref<32x128xbf16, #tpu.memory_space<vmem>>, %arg2: memref<32x1xf32, #tpu.memory_space<vmem>>, %arg3: memref<128x128xbf16, #tpu.memory_space<vmem>>, %arg4: memref<128x128xbf16, #tpu.memory_space<vmem>>, %arg5: memref<1x128xf32, #tpu.memory_space<vmem>>, %arg6: memref<1x128xf32, #tpu.memory_space<vmem>>, %arg7: memref<1x128xf32, #tpu.memory_space<vmem>>, %arg8: memref<128x128xbf16, #tpu.memory_space<vmem>>, %arg9: memref<128x128xbf16, #tpu.memory_space<vmem>>, %arg10: memref<1x128xf32, #tpu.memory_space<vmem>>, %arg11: memref<1x128xf32, #tpu.memory_space<vmem>>, %arg12: memref<1x128xf32, #tpu.memory_space<vmem>>, %arg13: memref<128x128xbf16, #tpu.memory_space<vmem>>, %arg14: memref<128x128xbf16, #tpu.memory_space<vmem>>, %arg15: memref<1x128xf32, #tpu.memory_space<vmem>>, %arg16: memref<128x128xbf16, #tpu.memory_space<vmem>>, %arg17: memref<1x128xf32, #tpu.memory_space<vmem>>, %arg18: memref<128x128xbf16, #tpu.memory_space<vmem>>, %arg19: memref<1x128xf32, #tpu.memory_space<vmem>>, %arg20: memref<32x128xbf16, #tpu.memory_space<vmem>>, %arg21: memref<32x128xf32, #tpu.memory_space<vmem>>) attributes {dimension_semantics = [], scalar_prefetch = 0 : i64, scratch_operands = 0 : i64, tpu.core_type = #tpu.core_type<tc>} {
    %c0 = arith.constant 0 : index
    %c0_0 = arith.constant 0 : index
    %0 = vector.load %arg0[%c0, %c0_0] : memref<32x32xi8, #tpu.memory_space<vmem>>, vector<32x32xi8>
    %1 = arith.sitofp %0 : vector<32x32xi8> to vector<32x32xbf16>
    %c0_1 = arith.constant 0 : index
    %c0_2 = arith.constant 0 : index
    %2 = vector.load %arg2[%c0_1, %c0_2] : memref<32x1xf32, #tpu.memory_space<vmem>>, vector<32x1xf32>
    %c0_3 = arith.constant 0 : index
    %c0_4 = arith.constant 0 : index
    %3 = vector.load %arg1[%c0_3, %c0_4] : memref<32x128xbf16, #tpu.memory_space<vmem>>, vector<32x128xbf16>
    %cst = arith.constant dense<0.000000e+00> : vector<32x128xf32>
    %4 = tpu.matmul %1, %3, %cst {dimension_numbers = #tpu.dot_dimension_numbers<[1], [0], [0], [1], [0, 0, 1, 1], [], []>} : vector<32x32xbf16>, vector<32x128xbf16>, vector<32x128xf32> -> vector<32x128xf32>
    %5 = vector.broadcast %2 : vector<32x1xf32> to vector<32x128xf32>
    %6 = arith.mulf %4, %5 : vector<32x128xf32>
    %7 = arith.truncf %6 : vector<32x128xf32> to vector<32x128xbf16>
    %c0_5 = arith.constant 0 : index
    %c0_6 = arith.constant 0 : index
    %8 = vector.load %arg3[%c0_5, %c0_6] : memref<128x128xbf16, #tpu.memory_space<vmem>>, vector<128x128xbf16>
    %cst_7 = arith.constant dense<0.000000e+00> : vector<32x128xf32>
    %9 = tpu.matmul %7, %8, %cst_7 {dimension_numbers = #tpu.dot_dimension_numbers<[1], [0], [0], [1], [0, 0, 1, 1], [], []>} : vector<32x128xbf16>, vector<128x128xbf16>, vector<32x128xf32> -> vector<32x128xf32>
    %c0_8 = arith.constant 0 : index
    %c0_9 = arith.constant 0 : index
    %10 = vector.load %arg4[%c0_8, %c0_9] : memref<128x128xbf16, #tpu.memory_space<vmem>>, vector<128x128xbf16>
    %cst_10 = arith.constant dense<0.000000e+00> : vector<32x128xf32>
    %11 = tpu.matmul %3, %10, %cst_10 {dimension_numbers = #tpu.dot_dimension_numbers<[1], [0], [0], [1], [0, 0, 1, 1], [], []>} : vector<32x128xbf16>, vector<128x128xbf16>, vector<32x128xf32> -> vector<32x128xf32>
    %12 = arith.addf %9, %11 : vector<32x128xf32>
    %c0_11 = arith.constant 0 : index
    %c0_12 = arith.constant 0 : index
    %13 = vector.load %arg5[%c0_11, %c0_12] : memref<1x128xf32, #tpu.memory_space<vmem>>, vector<1x128xf32>
    %14 = vector.broadcast %13 : vector<1x128xf32> to vector<32x128xf32>
    %15 = arith.addf %12, %14 : vector<32x128xf32>
    %cst_13 = arith.constant 0.000000e+00 : f32
    %16 = vector.broadcast %cst_13 : f32 to vector<32x128xf32>
    %17 = arith.maximumf %15, %16 : vector<32x128xf32>
    %c0_14 = arith.constant 0 : index
    %c0_15 = arith.constant 0 : index
    %18 = vector.load %arg6[%c0_14, %c0_15] : memref<1x128xf32, #tpu.memory_space<vmem>>, vector<1x128xf32>
    %c0_16 = arith.constant 0 : index
    %c0_17 = arith.constant 0 : index
    %19 = vector.load %arg7[%c0_16, %c0_17] : memref<1x128xf32, #tpu.memory_space<vmem>>, vector<1x128xf32>
    %cst_18 = arith.constant dense<0.000000e+00> : vector<32xf32>
    %20 = vector.multi_reduction <add>, %17, %cst_18 [1] : vector<32x128xf32> to vector<32xf32>
    %21 = vector.shape_cast %20 : vector<32xf32> to vector<32x1xf32>
    %cst_19 = arith.constant 3.125000e-02 : f32
    %22 = vector.broadcast %cst_19 : f32 to vector<32x1xf32>
    %23 = arith.mulf %21, %22 : vector<32x1xf32>
    %24 = tpu.iota {dimensions = array<i32: 1>} : vector<32x128xi32>
    %c32_i32 = arith.constant 32 : i32
    %25 = vector.broadcast %c32_i32 : i32 to vector<32x128xi32>
    %26 = arith.cmpi slt, %24, %25 : vector<32x128xi32>
    %27 = arith.extui %26 : vector<32x128xi1> to vector<32x128xi32>
    %28 = arith.sitofp %27 : vector<32x128xi32> to vector<32x128xf32>
    %29 = vector.broadcast %23 : vector<32x1xf32> to vector<32x128xf32>
    %30 = arith.subf %17, %29 : vector<32x128xf32>
    %31 = arith.mulf %30, %28 : vector<32x128xf32>
    %32 = arith.mulf %31, %31 : vector<32x128xf32>
    %cst_20 = arith.constant dense<0.000000e+00> : vector<32xf32>
    %33 = vector.multi_reduction <add>, %32, %cst_20 [1] : vector<32x128xf32> to vector<32xf32>
    %34 = vector.shape_cast %33 : vector<32xf32> to vector<32x1xf32>
    %cst_21 = arith.constant 3.125000e-02 : f32
    %35 = vector.broadcast %cst_21 : f32 to vector<32x1xf32>
    %36 = arith.mulf %34, %35 : vector<32x1xf32>
    %cst_22 = arith.constant 9.99999974E-6 : f32
    %37 = vector.broadcast %cst_22 : f32 to vector<32x1xf32>
    %38 = arith.addf %36, %37 : vector<32x1xf32>
    %39 = math.rsqrt %38 : vector<32x1xf32>
    %40 = vector.broadcast %39 : vector<32x1xf32> to vector<32x128xf32>
    %41 = arith.mulf %31, %40 : vector<32x128xf32>
    %42 = vector.broadcast %18 : vector<1x128xf32> to vector<32x128xf32>
    %43 = arith.mulf %41, %42 : vector<32x128xf32>
    %44 = vector.broadcast %19 : vector<1x128xf32> to vector<32x128xf32>
    %45 = arith.addf %43, %44 : vector<32x128xf32>
    %46 = arith.truncf %45 : vector<32x128xf32> to vector<32x128xbf16>
    %cst_23 = arith.constant dense<0.000000e+00> : vector<32x128xf32>
    %47 = tpu.matmul %1, %46, %cst_23 {dimension_numbers = #tpu.dot_dimension_numbers<[1], [0], [0], [1], [0, 0, 1, 1], [], []>} : vector<32x32xbf16>, vector<32x128xbf16>, vector<32x128xf32> -> vector<32x128xf32>
    %48 = vector.broadcast %2 : vector<32x1xf32> to vector<32x128xf32>
    %49 = arith.mulf %47, %48 : vector<32x128xf32>
    %50 = arith.truncf %49 : vector<32x128xf32> to vector<32x128xbf16>
    %c0_24 = arith.constant 0 : index
    %c0_25 = arith.constant 0 : index
    %51 = vector.load %arg8[%c0_24, %c0_25] : memref<128x128xbf16, #tpu.memory_space<vmem>>, vector<128x128xbf16>
    %cst_26 = arith.constant dense<0.000000e+00> : vector<32x128xf32>
    %52 = tpu.matmul %50, %51, %cst_26 {dimension_numbers = #tpu.dot_dimension_numbers<[1], [0], [0], [1], [0, 0, 1, 1], [], []>} : vector<32x128xbf16>, vector<128x128xbf16>, vector<32x128xf32> -> vector<32x128xf32>
    %c0_27 = arith.constant 0 : index
    %c0_28 = arith.constant 0 : index
    %53 = vector.load %arg9[%c0_27, %c0_28] : memref<128x128xbf16, #tpu.memory_space<vmem>>, vector<128x128xbf16>
    %cst_29 = arith.constant dense<0.000000e+00> : vector<32x128xf32>
    %54 = tpu.matmul %46, %53, %cst_29 {dimension_numbers = #tpu.dot_dimension_numbers<[1], [0], [0], [1], [0, 0, 1, 1], [], []>} : vector<32x128xbf16>, vector<128x128xbf16>, vector<32x128xf32> -> vector<32x128xf32>
    %55 = arith.addf %52, %54 : vector<32x128xf32>
    %c0_30 = arith.constant 0 : index
    %c0_31 = arith.constant 0 : index
    %56 = vector.load %arg10[%c0_30, %c0_31] : memref<1x128xf32, #tpu.memory_space<vmem>>, vector<1x128xf32>
    %57 = vector.broadcast %56 : vector<1x128xf32> to vector<32x128xf32>
    %58 = arith.addf %55, %57 : vector<32x128xf32>
    %cst_32 = arith.constant 0.000000e+00 : f32
    %59 = vector.broadcast %cst_32 : f32 to vector<32x128xf32>
    %60 = arith.maximumf %58, %59 : vector<32x128xf32>
    %c0_33 = arith.constant 0 : index
    %c0_34 = arith.constant 0 : index
    %61 = vector.load %arg11[%c0_33, %c0_34] : memref<1x128xf32, #tpu.memory_space<vmem>>, vector<1x128xf32>
    %c0_35 = arith.constant 0 : index
    %c0_36 = arith.constant 0 : index
    %62 = vector.load %arg12[%c0_35, %c0_36] : memref<1x128xf32, #tpu.memory_space<vmem>>, vector<1x128xf32>
    %cst_37 = arith.constant dense<0.000000e+00> : vector<32xf32>
    %63 = vector.multi_reduction <add>, %60, %cst_37 [1] : vector<32x128xf32> to vector<32xf32>
    %64 = vector.shape_cast %63 : vector<32xf32> to vector<32x1xf32>
    %cst_38 = arith.constant 3.125000e-02 : f32
    %65 = vector.broadcast %cst_38 : f32 to vector<32x1xf32>
    %66 = arith.mulf %64, %65 : vector<32x1xf32>
    %67 = tpu.iota {dimensions = array<i32: 1>} : vector<32x128xi32>
    %c32_i32_39 = arith.constant 32 : i32
    %68 = vector.broadcast %c32_i32_39 : i32 to vector<32x128xi32>
    %69 = arith.cmpi slt, %67, %68 : vector<32x128xi32>
    %70 = arith.extui %69 : vector<32x128xi1> to vector<32x128xi32>
    %71 = arith.sitofp %70 : vector<32x128xi32> to vector<32x128xf32>
    %72 = vector.broadcast %66 : vector<32x1xf32> to vector<32x128xf32>
    %73 = arith.subf %60, %72 : vector<32x128xf32>
    %74 = arith.mulf %73, %71 : vector<32x128xf32>
    %75 = arith.mulf %74, %74 : vector<32x128xf32>
    %cst_40 = arith.constant dense<0.000000e+00> : vector<32xf32>
    %76 = vector.multi_reduction <add>, %75, %cst_40 [1] : vector<32x128xf32> to vector<32xf32>
    %77 = vector.shape_cast %76 : vector<32xf32> to vector<32x1xf32>
    %cst_41 = arith.constant 3.125000e-02 : f32
    %78 = vector.broadcast %cst_41 : f32 to vector<32x1xf32>
    %79 = arith.mulf %77, %78 : vector<32x1xf32>
    %cst_42 = arith.constant 9.99999974E-6 : f32
    %80 = vector.broadcast %cst_42 : f32 to vector<32x1xf32>
    %81 = arith.addf %79, %80 : vector<32x1xf32>
    %82 = math.rsqrt %81 : vector<32x1xf32>
    %83 = vector.broadcast %82 : vector<32x1xf32> to vector<32x128xf32>
    %84 = arith.mulf %74, %83 : vector<32x128xf32>
    %85 = vector.broadcast %61 : vector<1x128xf32> to vector<32x128xf32>
    %86 = arith.mulf %84, %85 : vector<32x128xf32>
    %87 = vector.broadcast %62 : vector<1x128xf32> to vector<32x128xf32>
    %88 = arith.addf %86, %87 : vector<32x128xf32>
    %89 = arith.truncf %88 : vector<32x128xf32> to vector<32x128xbf16>
    %cst_43 = arith.constant dense<0.000000e+00> : vector<32x128xf32>
    %90 = tpu.matmul %1, %89, %cst_43 {dimension_numbers = #tpu.dot_dimension_numbers<[1], [0], [0], [1], [0, 0, 1, 1], [], []>} : vector<32x32xbf16>, vector<32x128xbf16>, vector<32x128xf32> -> vector<32x128xf32>
    %91 = vector.broadcast %2 : vector<32x1xf32> to vector<32x128xf32>
    %92 = arith.mulf %90, %91 : vector<32x128xf32>
    %93 = arith.truncf %92 : vector<32x128xf32> to vector<32x128xbf16>
    %c0_44 = arith.constant 0 : index
    %c0_45 = arith.constant 0 : index
    %94 = vector.load %arg13[%c0_44, %c0_45] : memref<128x128xbf16, #tpu.memory_space<vmem>>, vector<128x128xbf16>
    %cst_46 = arith.constant dense<0.000000e+00> : vector<32x128xf32>
    %95 = tpu.matmul %93, %94, %cst_46 {dimension_numbers = #tpu.dot_dimension_numbers<[1], [0], [0], [1], [0, 0, 1, 1], [], []>} : vector<32x128xbf16>, vector<128x128xbf16>, vector<32x128xf32> -> vector<32x128xf32>
    %c0_47 = arith.constant 0 : index
    %c0_48 = arith.constant 0 : index
    %96 = vector.load %arg14[%c0_47, %c0_48] : memref<128x128xbf16, #tpu.memory_space<vmem>>, vector<128x128xbf16>
    %cst_49 = arith.constant dense<0.000000e+00> : vector<32x128xf32>
    %97 = tpu.matmul %89, %96, %cst_49 {dimension_numbers = #tpu.dot_dimension_numbers<[1], [0], [0], [1], [0, 0, 1, 1], [], []>} : vector<32x128xbf16>, vector<128x128xbf16>, vector<32x128xf32> -> vector<32x128xf32>
    %98 = arith.addf %95, %97 : vector<32x128xf32>
    %c0_50 = arith.constant 0 : index
    %c0_51 = arith.constant 0 : index
    %99 = vector.load %arg15[%c0_50, %c0_51] : memref<1x128xf32, #tpu.memory_space<vmem>>, vector<1x128xf32>
    %100 = vector.broadcast %99 : vector<1x128xf32> to vector<32x128xf32>
    %101 = arith.addf %98, %100 : vector<32x128xf32>
    %cst_52 = arith.constant 0.000000e+00 : f32
    %102 = vector.broadcast %cst_52 : f32 to vector<32x128xf32>
    %103 = arith.maximumf %101, %102 : vector<32x128xf32>
    %104 = arith.truncf %103 : vector<32x128xf32> to vector<32x128xbf16>
    %c0_53 = arith.constant 0 : index
    %c0_54 = arith.constant 0 : index
    %105 = vector.load %arg20[%c0_53, %c0_54] : memref<32x128xbf16, #tpu.memory_space<vmem>>, vector<32x128xbf16>
    tpu.vector_store %arg20[%c0_53, %c0_54], %104 {strides = array<i32>} : memref<32x128xbf16, #tpu.memory_space<vmem>>, vector<32x128xbf16>,
    %106 = arith.truncf %103 : vector<32x128xf32> to vector<32x128xbf16>
    %c0_55 = arith.constant 0 : index
    %c0_56 = arith.constant 0 : index
    %107 = vector.load %arg16[%c0_55, %c0_56] : memref<128x128xbf16, #tpu.memory_space<vmem>>, vector<128x128xbf16>
    %cst_57 = arith.constant dense<0.000000e+00> : vector<32x128xf32>
    %108 = tpu.matmul %106, %107, %cst_57 {dimension_numbers = #tpu.dot_dimension_numbers<[1], [0], [0], [1], [0, 0, 1, 1], [], []>} : vector<32x128xbf16>, vector<128x128xbf16>, vector<32x128xf32> -> vector<32x128xf32>
    %c0_58 = arith.constant 0 : index
    %c0_59 = arith.constant 0 : index
    %109 = vector.load %arg17[%c0_58, %c0_59] : memref<1x128xf32, #tpu.memory_space<vmem>>, vector<1x128xf32>
    %110 = vector.broadcast %109 : vector<1x128xf32> to vector<32x128xf32>
    %111 = arith.addf %108, %110 : vector<32x128xf32>
    %cst_60 = arith.constant 0.000000e+00 : f32
    %112 = vector.broadcast %cst_60 : f32 to vector<32x128xf32>
    %113 = arith.maximumf %111, %112 : vector<32x128xf32>
    %114 = arith.truncf %113 : vector<32x128xf32> to vector<32x128xbf16>
    %c0_61 = arith.constant 0 : index
    %c0_62 = arith.constant 0 : index
    %115 = vector.load %arg18[%c0_61, %c0_62] : memref<128x128xbf16, #tpu.memory_space<vmem>>, vector<128x128xbf16>
    %cst_63 = arith.constant dense<0.000000e+00> : vector<32x128xf32>
    %116 = tpu.matmul %114, %115, %cst_63 {dimension_numbers = #tpu.dot_dimension_numbers<[1], [0], [0], [1], [0, 0, 1, 1], [], []>} : vector<32x128xbf16>, vector<128x128xbf16>, vector<32x128xf32> -> vector<32x128xf32>
    %c0_64 = arith.constant 0 : index
    %c0_65 = arith.constant 0 : index
    %117 = vector.load %arg19[%c0_64, %c0_65] : memref<1x128xf32, #tpu.memory_space<vmem>>, vector<1x128xf32>
    %118 = vector.broadcast %117 : vector<1x128xf32> to vector<32x128xf32>
    %119 = arith.addf %116, %118 : vector<32x128xf32>
    %120 = tpu.iota {dimensions = array<i32: 1>} : vector<32x128xi32>
    %c7_i32 = arith.constant 7 : i32
    %121 = vector.broadcast %c7_i32 : i32 to vector<32x128xi32>
    %122 = arith.cmpi slt, %120, %121 : vector<32x128xi32>
    %cst_66 = arith.constant -1.000000e+30 : f32
    %123 = vector.broadcast %cst_66 : f32 to vector<32x128xf32>
    %124 = arith.select %122, %119, %123 : vector<32x128xi1>, vector<32x128xf32>
    %cst_67 = arith.constant dense<0xFF800000> : vector<32xf32>
    %125 = vector.multi_reduction <maximumf>, %124, %cst_67 [1] : vector<32x128xf32> to vector<32xf32>
    %126 = vector.shape_cast %125 : vector<32xf32> to vector<32x1xf32>
    %127 = vector.broadcast %126 : vector<32x1xf32> to vector<32x128xf32>
    %128 = arith.subf %124, %127 : vector<32x128xf32>
    %129 = math.exp %128 : vector<32x128xf32>
    %cst_68 = arith.constant dense<0.000000e+00> : vector<32xf32>
    %130 = vector.multi_reduction <add>, %129, %cst_68 [1] : vector<32x128xf32> to vector<32xf32>
    %131 = vector.shape_cast %130 : vector<32xf32> to vector<32x1xf32>
    %132 = math.log %131 : vector<32x1xf32>
    %133 = vector.broadcast %132 : vector<32x1xf32> to vector<32x128xf32>
    %134 = arith.subf %128, %133 : vector<32x128xf32>
    %c0_69 = arith.constant 0 : index
    %c0_70 = arith.constant 0 : index
    %135 = vector.load %arg21[%c0_69, %c0_70] : memref<32x128xf32, #tpu.memory_space<vmem>>, vector<32x128xf32>
    tpu.vector_store %arg21[%c0_69, %c0_70], %134 {strides = array<i32>} : memref<32x128xf32, #tpu.memory_space<vmem>>, vector<32x128xf32>,
    return
  }
}

</mosaic_0001>

<bundles_post_ra>
// kernel: gnn_stack_forward.1
= control target key start
LH: loop header
LB: loop body
LE: loop exit
PB: predicated region body
PF: predicated region fallthrough
CT: control target
= control target key end

     0   :  { %v1969_v1 = vmov 0   ;;  %vm91_vm0 = vcmask 261120   ;;  %v428_v53 = vlaneseq  ;;  %v1970_v58 = vmov 0.0   ;;  %s2389_s1 = inlined_call_operand.vmem [shape: bf16[32,128], index: 1, kind: input, shape index: {}]   ;;  %s2390_s0 = inlined_call_operand.vmem [shape: s8[32,32], index: 0, kind: input, shape index: {}]   ;;  %s2391_s2 = inlined_call_operand.vmem [shape: f32[32,1], index: 2, kind: input, shape index: {}]   ;;  %s2392_s4 = inlined_call_operand.vmem [shape: bf16[128,128], index: 4, kind: input, shape index: {}]   ;;  %s2393_s3 = inlined_call_operand.vmem [shape: bf16[128,128], index: 3, kind: input, shape index: {}]   ;;  %s2394_s5 = inlined_call_operand.vmem [shape: f32[1,128], index: 5, kind: input, shape index: {}]   ;;  %s2395_s9 = inlined_call_operand.vmem [shape: bf16[128,128], index: 9, kind: input, shape index: {}]   ;;  %s2396_s8 = inlined_call_operand.vmem [shape: bf16[128,128], index: 8, kind: input, shape index: {}]   ;;  %s2397_s6 = inlined_call_operand.vmem [shape: f32[1,128], index: 6, kind: input, shape index: {}]   ;;  %s2398_s7 = inlined_call_operand.vmem [shape: f32[1,128], index: 7, kind: input, shape index: {}]   ;;  %s2399_s10 = inlined_call_operand.vmem [shape: f32[1,128], index: 10, kind: input, shape index: {}]   ;;  %s2400_s14 = inlined_call_operand.vmem [shape: bf16[128,128], index: 14, kind: input, shape index: {}]   ;;  %s2401_s13 = inlined_call_operand.vmem [shape: bf16[128,128], index: 13, kind: input, shape index: {}]   ;;  %s2402_s11 = inlined_call_operand.vmem [shape: f32[1,128], index: 11, kind: input, shape index: {}]   ;;  %s2403_s12 = inlined_call_operand.vmem [shape: f32[1,128], index: 12, kind: input, shape index: {}]   ;;  %s2404_s16 = inlined_call_operand.vmem [shape: bf16[128,128], index: 16, kind: input, shape index: {}]   ;;  %s2405_s18 = inlined_call_operand.vmem [shape: bf16[128,128], index: 18, kind: input, shape index: {}]   ;;  %s2406_s15 = inlined_call_operand.vmem [shape: f32[1,128], index: 15, kind: input, shape index: {}]   ;;  %s2407_s20 = inlined_call_operand.vmem [shape: bf16[32,128], index: 20, kind: output, shape index: {0}]   ;;  %s2408_s17 = inlined_call_operand.vmem [shape: f32[1,128], index: 17, kind: input, shape index: {}]   ;;  %s2409_s19 = inlined_call_operand.vmem [shape: f32[1,128], index: 19, kind: input, shape index: {}]   ;;  %s2410_s21 = inlined_call_operand.vmem [shape: f32[32,128], index: 21, kind: output, shape index: {1}]  }
   0x1   :  { %2415 = sst [smem:[#allocation2_spill]] %s2389_s1  ;;  %1869 = vset.pattern.permute.xlu0 %v1969_v1  ;;  %1870 = vset.pattern.permute.xlu1 %v1969_v1 }
   0x2   :  { %2416 = sst [smem:[#allocation3_spill]] %s2390_s0  ;;  %s2421_s26 = sld [smem:[#allocation2_spill]]  ;;  %v2177_v54 = vand.u32 127, %v428_v53  ;;  %v1892_v53 = vld [vmem:[%s2395_s9 + $0x18] sm:$0xff]  }
   0x3   :  { %2417 = sst [smem:[#allocation4_spill]] %s2391_s2  ;;  %s2422_s1 = sld [smem:[#allocation3_spill]] }
   0x4   :  { %2418 = sst [smem:[#allocation5_spill]] %s2392_s4  ;;  %vm430_vm1 = vcmp.lt.s32.totalorder %v2177_v54, 32  ;;  %vm1421_vm2 = vcmp.lt.s32.totalorder %v2177_v54, 7 }
   0x5   :  { %2419 = sst [smem:[#allocation6_spill]] %s2393_s3  ;;  %s2424_s4 = sld [smem:[#allocation5_spill]]  ;;  %v2180_v59 = vsel %vm430_vm1, 1.0, %v1970_v58  ;;  %v1896_v58 = vld [vmem:[%s2395_s9 + $0x38] sm:$0xff]  }
   0x6   :  { %2420 = sst [smem:[#allocation7_spill]] %s2394_s5  ;;  %s2423_s5 = sld [smem:[#allocation4_spill]] }
   0x7   :  { %s2426_s30 = sld [smem:[#allocation7_spill]] }
   0x8   :  { %v1871_v0 = vld [vmem:[%s2421_s26] sm:$0xff]   ;;  %v1872_v2 = vld [vmem:[%s2421_s26 + $0x8] sm:$0xff]  }
   0x9   :  { %1671 = vmatprep.subr.bf16.mxu0 %v1871_v0  ;;  %v68_v3 = vld [vmem:[%s2422_s1] sm:$0xff]  ;;  %1695 = vmatprep.mubr.bf16.mxu1 %v1871_v0  ;;  %s2425_s1 = sld [smem:[#allocation6_spill]] }
   0xa   :  { %1672 = vmatpush3.bf16.msra.mxu0 %v1871_v0  ;;  %v2096_v6 = vunpack.c.l.s8.bf16 %v68_v3  ;;  %v2112_v11 = vunpack.c.h.s8.bf16 %v68_v3 }
   0xb   :  { %1673 = vmatprep.subr.bf16.mxu0 %v1872_v2  ;;  %v1873_v9 = vld [vmem:[%s2424_s4] sm:$0xff]   ;;  %v1874_v10 = vld [vmem:[%s2424_s4 + $0x8] sm:$0xff]   ;;  %v1875_v12 = vld [vmem:[%s2424_s4 + $0x10] sm:$0xff]  }
   0xc   :  { %v71_v4 = vld [vmem:[%s2423_s5] sm:$0xff]  ;;  %v73_v5 = vld [vmem:[%s2423_s5 + $0x10] sm:$0xff]  ;;  %v72_v7 = vld [vmem:[%s2423_s5 + $0x8] sm:$0xff]  ;;  %1675 = vmatprep.mubr.msk.bf16.mxu0 %vm91_vm0, %v2096_v6  ;;  %1679 = vmatprep.subr.bf16.mxu1 %v1873_v9 }
   0xd   :  { %149 = vperm.xlu0 %1869, %v71_v4   ;;  %v74_v8 = vld [vmem:[%s2423_s5 + $0x18] sm:$0xff]  ;;  %159 = vperm.xlu1 %1870, %v73_v5   ;;  %v1877_v14 = vld [vmem:[%s2424_s4 + $0x20] sm:$0xff]   ;;  %v1878_v15 = vld [vmem:[%s2424_s4 + $0x28] sm:$0xff]  }
   0xe   :  { %1674 = vmatpush3.bf16.msra.mxu0 %v1872_v2  ;;  %1680 = vmatpush3.bf16.msra.mxu1 %v1873_v9  ;;  %v1876_v13 = vld [vmem:[%s2424_s4 + $0x18] sm:$0xff]   ;;  %v1879_v16 = vld [vmem:[%s2424_s4 + $0x30] sm:$0xff]   ;;  %v1498_v40 = vld [vmem:[%s2426_s30] ss:$0 sm:$0xff] }
   0xf   :  { %1681 = vmatprep.subr.bf16.mxu1 %v1874_v10  ;;  %v1880_v17 = vld [vmem:[%s2424_s4 + $0x38] sm:$0xff]   ;;  %v1881_v18 = vld [vmem:[%s2425_s1] sm:$0xff]   ;;  %v1882_v19 = vld [vmem:[%s2425_s1 + $0x8] sm:$0xff]  }
  0x10   :  { %v1883_v20 = vld [vmem:[%s2425_s1 + $0x10] sm:$0xff]   ;;  %v1884_v21 = vld [vmem:[%s2425_s1 + $0x18] sm:$0xff]   ;;  %v1885_v22 = vld [vmem:[%s2425_s1 + $0x20] sm:$0xff]  }
  0x11   :  { %154 = vperm.xlu0 %1869, %v72_v7   ;;  %164 = vperm.xlu1 %1870, %v74_v8   ;;  %v1886_v23 = vld [vmem:[%s2425_s1 + $0x28] sm:$0xff]   ;;  %v1887_v24 = vld [vmem:[%s2425_s1 + $0x30] sm:$0xff]   ;;  %v1888_v25 = vld [vmem:[%s2425_s1 + $0x38] sm:$0xff]  }
  0x12   :  { %1676 = vmatmul.mubr.msk.bf16.vlgmr.msra.gmra.mrb[0].mxu0 %vm91_vm0, %v2112_v11  ;;  %1682 = vmatpush3.bf16.msra.mxu1 %v1874_v10 }
  0x13   :  { %1723 = vmatprep.mubr.msk.bf16.mxu0 %vm91_vm0, %v2096_v6  ;;  %1683 = vmatprep.subr.bf16.mxu1 %v1875_v12 }
  0x16   :  { %1684 = vmatpush3.bf16.msra.mxu1 %v1875_v12 }
  0x17   :  { %1685 = vmatprep.subr.bf16.mxu1 %v1876_v13 }
  0x1a   :  { %1686 = vmatpush3.bf16.msra.mxu1 %v1876_v13 }
  0x1b   :  { %1687 = vmatprep.subr.bf16.mxu1 %v1877_v14 }
  0x1e   :  { %1688 = vmatpush3.bf16.msra.mxu1 %v1877_v14 }
  0x1f   :  { %1689 = vmatprep.subr.bf16.mxu1 %v1878_v15 }
  0x22   :  { %1690 = vmatpush3.bf16.msra.mxu1 %v1878_v15 }
  0x23   :  { %1691 = vmatprep.subr.bf16.mxu1 %v1879_v16 }
  0x26   :  { %1692 = vmatpush3.bf16.msra.mxu1 %v1879_v16 }
  0x27   :  { %1693 = vmatprep.subr.bf16.mxu1 %v1880_v17 }
  0x2a   :  { %1694 = vmatpush3.bf16.msra.mxu1 %v1880_v17 }
  0x2b   :  { %1699 = vmatprep.subr.bf16.mxu1 %v1881_v18 }
  0x2d   :  { %1696 = vmatmul.mubr.bf16.vlgmr.msra.gmra.mrb[0].mxu1 %v1872_v2 }
  0x2e   :  { %1700 = vmatpush3.bf16.msra.mxu1 %v1881_v18 }
  0x2f   :  { %1701 = vmatprep.subr.bf16.mxu1 %v1882_v19 }
  0x32   :  { %1702 = vmatpush3.bf16.msra.mxu1 %v1882_v19 }
  0x33   :  { %1703 = vmatprep.subr.bf16.mxu1 %v1883_v20 }
  0x36   :  { %1704 = vmatpush3.bf16.msra.mxu1 %v1883_v20 }
  0x37   :  { %1705 = vmatprep.subr.bf16.mxu1 %v1884_v21 }
  0x3a   :  { %1706 = vmatpush3.bf16.msra.mxu1 %v1884_v21 }
  0x3b   :  { %1707 = vmatprep.subr.bf16.mxu1 %v1885_v22 }
  0x3e   :  { %1708 = vmatpush3.bf16.msra.mxu1 %v1885_v22 }
  0x3f   :  { %1709 = vmatprep.subr.bf16.mxu1 %v1886_v23 }
  0x42   :  { %1710 = vmatpush3.bf16.msra.mxu1 %v1886_v23 }
  0x43   :  { %1711 = vmatprep.subr.bf16.mxu1 %v1887_v24 }
  0x46   :  { %1712 = vmatpush3.bf16.msra.mxu1 %v1887_v24 }
  0x47   :  { %1713 = vmatprep.subr.bf16.mxu1 %v1888_v25 }
  0x4a   :  { %1714 = vmatpush3.bf16.msra.mxu1 %v1888_v25 }
  0x8c   :  { %v2160_v26 = vpop.permute.xlu1 %159  ;;  %v2162_v27 = vpop.permute.xlu0 %149 }
  0x90   :  { %v2164_v30 = vpop.permute.xlu1 %164  ;;  %v2166_v32 = vpop.permute.xlu0 %154 }
  0xe5   :  { %v1677_v28 = vpop.f32.mrb[0].mxu0 }
  0xe6   :  { %v132_v29 = vpop.f32.mrb[1].mxu0  ;;  %v169_v33 = vmul.f32 %v1677_v28, %v2160_v26 }
  0xe7   :  { %v1678_v31 = vpop.f32.mrb[2].mxu0  ;;  %v167_v36 = vmul.f32 %v2162_v27, %v132_v29  ;;  %v1500_v29 = vld [vmem:[%s2397_s6] ss:$0 sm:$0xff] }
  0xe8   :  { %v170_v34 = vmul.f32 %v1678_v31, %v2164_v30  ;;  %v135_v35 = vpop.f32.mrb[3].mxu0 }
  0xe9   :  { %v168_v37 = vmul.f32 %v2166_v32, %v135_v35 }
  0xea   :  { %v172_v38 = vpack.c.bf16 %v170_v34, %v169_v33 }
  0xeb   :  { %v171_v39 = vpack.c.bf16 %v168_v37, %v167_v36  ;;  %v1501_v37 = vld [vmem:[%s2398_s7] ss:$0 sm:$0xff] }
  0xed   :  { %1715 = vmatprep.mubr.bf16.mxu1 %v171_v39 }
  0xee   :  { %1716 = vmatmul.mubr.bf16.vlgmr.msra.gmra.mrb[0].mxu1 %v172_v38 }
  0xef   :  { %1771 = vmatprep.mubr.msk.bf16.mxu1 %vm91_vm0, %v2096_v6 }
 0x1c1   :  { %v1717_v41 = vpop.f32.mrb[0].mxu1 }
 0x1c2   :  { %v384_v42 = vpop.f32.mrb[1].mxu1  ;;  %v408_v46 = vadd.f32 %v1717_v41, %v1498_v40 }
 0x1c3   :  { %v406_v43 = vadd.f32 %v1498_v40, %v384_v42  ;;  %v1718_v44 = vpop.f32.mrb[2].mxu1 }
 0x1c4   :  { %v387_v45 = vpop.f32.mrb[3].mxu1  ;;  %v412_v50 = vmax.f32 %v408_v46, 0.0  ;;  %v409_v51 = vadd.f32 %v1718_v44, %v1498_v40 }
 0x1c5   :  { %v410_v47 = vmax.f32 %v406_v43, 0.0  ;;  %v407_v48 = vadd.f32 %v1498_v40, %v387_v45 }
 0x1c6   :  { %v413_v52 = vmax.f32 %v409_v51, 0.0  ;;  %v1890_v51 = vld [vmem:[%s2395_s9 + $0x8] sm:$0xff]  }
 0x1c7   :  { %v411_v49 = vmax.f32 %v407_v48, 0.0  ;;  %416 = vadd.xlane.f32.xlu0 %v410_v47 }
 0x1c9   :  { %418 = vadd.xlane.f32.xlu1 %v411_v49 }
 0x1cb   :  { %420 = vadd.xlane.f32.xlu0 %v412_v50 }
 0x1cf   :  { %422 = vadd.xlane.f32.xlu0 %v413_v52 }
 0x254   :  { %v417_v55 = vpop.xlane.xlu0 %416 }
 0x255   :  { %v424_v56 = vmul.f32 0.03125, %v417_v55  ;;  %v1893_v55 = vld [vmem:[%s2395_s9 + $0x20] sm:$0xff]  }
 0x256   :  { %v419_v57 = vpop.xlane.xlu1 %418 }
 0x257   :  { %v433_v60 = vsub.f32 %v410_v47, %v424_v56  ;;  %v425_v61 = vmul.f32 0.03125, %v419_v57  ;;  %v1894_v56 = vld [vmem:[%s2395_s9 + $0x28] sm:$0xff]   ;;  %v1895_v57 = vld [vmem:[%s2395_s9 + $0x30] sm:$0xff]  }
 0x258   :  { %v421_v62 = vpop.xlane.xlu0 %420 }
 0x259   :  { %v434_v63 = vsub.f32 %v411_v49, %v425_v61  ;;  %v426_v0 = vmul.f32 0.03125, %v421_v62  ;;  %v437_v1 = vmul.f32 %v2180_v59, %v433_v60  ;;  %v1897_v60 = vld [vmem:[%s2396_s8] sm:$0xff]   ;;  %v1898_v61 = vld [vmem:[%s2396_s8 + $0x8] sm:$0xff]   ;;  %v1899_v62 = vld [vmem:[%s2396_s8 + $0x10] sm:$0xff]  }
 0x25b   :  { %v435_v2 = vsub.f32 %v412_v50, %v426_v0  ;;  %v441_v3 = vmul.f32 %v437_v1, %v437_v1  ;;  %v438_v4 = vmul.f32 %v2180_v59, %v434_v63  ;;  %v1889_v50 = vld [vmem:[%s2395_s9] sm:$0xff]   ;;  %v1900_v63 = vld [vmem:[%s2396_s8 + $0x18] sm:$0xff]  }
 0x25c   :  { %v423_v5 = vpop.xlane.xlu0 %422  ;;  %v1901_v0 = vld [vmem:[%s2396_s8 + $0x20] sm:$0xff]  }
 0x25d   :  { %v427_v6 = vmul.f32 0.03125, %v423_v5  ;;  %445 = vadd.xlane.f32.xlu1 %v441_v3  ;;  %v442_v7 = vmul.f32 %v438_v4, %v438_v4  ;;  %v439_v8 = vmul.f32 %v2180_v59, %v435_v2  ;;  %v1903_v2 = vld [vmem:[%s2396_s8 + $0x30] sm:$0xff]   ;;  %v1904_v3 = vld [vmem:[%s2396_s8 + $0x38] sm:$0xff]  }
 0x25f   :  { %v436_v9 = vsub.f32 %v413_v52, %v427_v6  ;;  %447 = vadd.xlane.f32.xlu0 %v442_v7  ;;  %v443_v10 = vmul.f32 %v439_v8, %v439_v8  ;;  %v1891_v52 = vld [vmem:[%s2395_s9 + $0x10] sm:$0xff]  }
 0x261   :  { %449 = vadd.xlane.f32.xlu1 %v443_v10  ;;  %v440_v12 = vmul.f32 %v2180_v59, %v436_v9 }
 0x263   :  { %v444_v13 = vmul.f32 %v440_v12, %v440_v12 }
 0x265   :  { %451 = vadd.xlane.f32.xlu0 %v444_v13 }
 0x2ea   :  { %v446_v14 = vpop.xlane.xlu1 %445 }
 0x2eb   :  { %v453_v15 = vmul.f32 0.03125, %v446_v14 }
 0x2ec   :  { %v448_v16 = vpop.xlane.xlu0 %447 }
 0x2ed   :  { %v457_v17 = vadd.f32 1e-05, %v453_v15  ;;  %v454_v18 = vmul.f32 0.03125, %v448_v16  ;;  %v1520_v15 = vld [vmem:[%s2399_s10] ss:$0 sm:$0xff] }
 0x2ee   :  { %v450_v19 = vpop.xlane.xlu1 %449 }
 0x2ef   :  { %1937 = vrsqrt.f32 %v457_v17  ;;  %v458_v20 = vadd.f32 1e-05, %v454_v18  ;;  %v455_v21 = vmul.f32 0.03125, %v450_v19 }
 0x2f1   :  { %1939 = vrsqrt.f32 %v458_v20  ;;  %v459_v22 = vadd.f32 1e-05, %v455_v21 }
 0x2f2   :  { %v452_v23 = vpop.xlane.xlu0 %451 }
 0x2f3   :  { %1941 = vrsqrt.f32 %v459_v22  ;;  %v456_v24 = vmul.f32 0.03125, %v452_v23 }
 0x2f5   :  { %v460_v25 = vadd.f32 1e-05, %v456_v24 }
 0x2f7   :  { %1943 = vrsqrt.f32 %v460_v25 }
 0x2f9   :  { %v1938_v28 = vpop.eup %1937 }
 0x2fa   :  { %v465_v31 = vmul.f32 %v1938_v28, %v437_v1  ;;  %v1902_v1 = vld [vmem:[%s2396_s8 + $0x28] sm:$0xff]  }
 0x2fb   :  { %v1940_v33 = vpop.eup %1939 }
 0x2fc   :  { %v466_v34 = vmul.f32 %v1940_v33, %v438_v4  ;;  %v475_v35 = vmul.f32 %v1500_v29, %v465_v31 }
 0x2fd   :  { %v1942_v36 = vpop.eup %1941 }
 0x2fe   :  { %v476_v38 = vmul.f32 %v1500_v29, %v466_v34  ;;  %v467_v39 = vmul.f32 %v1942_v36, %v439_v8  ;;  %v485_v40 = vadd.f32 %v1501_v37, %v475_v35 }
 0x300   :  { %v486_v41 = vadd.f32 %v1501_v37, %v476_v38  ;;  %v477_v45 = vmul.f32 %v1500_v29, %v467_v39 }
 0x301   :  { %v1944_v42 = vpop.eup %1943 }
 0x302   :  { %v489_v43 = vpack.c.bf16 %v486_v41, %v485_v40  ;;  %v468_v44 = vmul.f32 %v1944_v42, %v440_v12  ;;  %v487_v47 = vadd.f32 %v1501_v37, %v477_v45 }
 0x304   :  { %1719 = vmatprep.subr.bf16.mxu0 %v489_v43  ;;  %v478_v46 = vmul.f32 %v1500_v29, %v468_v44 }
 0x305   :  { %1720 = vmatpush3.bf16.msra.mxu0 %v489_v43 }
 0x306   :  { %v488_v48 = vadd.f32 %v1501_v37, %v478_v46 }
 0x308   :  { %v490_v49 = vpack.c.bf16 %v488_v48, %v487_v47 }
 0x30a   :  { %1721 = vmatprep.subr.bf16.mxu0 %v490_v49 }
 0x30b   :  { %1722 = vmatpush3.bf16.msra.mxu0 %v490_v49 }
 0x30c   :  { %1727 = vmatprep.subr.bf16.mxu0 %v1889_v50 }
 0x30e   :  { %1724 = vmatmul.mubr.msk.bf16.vlgmr.msra.gmra.mrb[4].mxu0 %vm91_vm0, %v2112_v11 }
 0x30f   :  { %1728 = vmatpush3.bf16.msra.mxu0 %v1889_v50  ;;  %1743 = vmatprep.mubr.bf16.mxu0 %v489_v43 }
 0x310   :  { %1729 = vmatprep.subr.bf16.mxu0 %v1890_v51 }
 0x313   :  { %1730 = vmatpush3.bf16.msra.mxu0 %v1890_v51 }
 0x314   :  { %1731 = vmatprep.subr.bf16.mxu0 %v1891_v52 }
 0x317   :  { %1732 = vmatpush3.bf16.msra.mxu0 %v1891_v52 }
 0x318   :  { %1733 = vmatprep.subr.bf16.mxu0 %v1892_v53 }
 0x31b   :  { %1734 = vmatpush3.bf16.msra.mxu0 %v1892_v53 }
 0x31c   :  { %1735 = vmatprep.subr.bf16.mxu0 %v1893_v55 }
 0x31f   :  { %1736 = vmatpush3.bf16.msra.mxu0 %v1893_v55 }
 0x320   :  { %1737 = vmatprep.subr.bf16.mxu0 %v1894_v56 }
 0x323   :  { %1738 = vmatpush3.bf16.msra.mxu0 %v1894_v56 }
 0x324   :  { %1739 = vmatprep.subr.bf16.mxu0 %v1895_v57 }
 0x327   :  { %1740 = vmatpush3.bf16.msra.mxu0 %v1895_v57 }
 0x328   :  { %1741 = vmatprep.subr.bf16.mxu0 %v1896_v58 }
 0x32b   :  { %1742 = vmatpush3.bf16.msra.mxu0 %v1896_v58 }
 0x32c   :  { %1747 = vmatprep.subr.bf16.mxu0 %v1897_v60 }
 0x32e   :  { %1744 = vmatmul.mubr.bf16.vlgmr.msra.gmra.mrb[8].mxu0 %v490_v49 }
 0x32f   :  { %1748 = vmatpush3.bf16.msra.mxu0 %v1897_v60 }
 0x330   :  { %1749 = vmatprep.subr.bf16.mxu0 %v1898_v61 }
 0x333   :  { %1750 = vmatpush3.bf16.msra.mxu0 %v1898_v61 }
 0x334   :  { %1751 = vmatprep.subr.bf16.mxu0 %v1899_v62 }
 0x337   :  { %1752 = vmatpush3.bf16.msra.mxu0 %v1899_v62 }
 0x338   :  { %1753 = vmatprep.subr.bf16.mxu0 %v1900_v63 }
 0x33b   :  { %1754 = vmatpush3.bf16.msra.mxu0 %v1900_v63 }
 0x33c   :  { %1755 = vmatprep.subr.bf16.mxu0 %v1901_v0 }
 0x33f   :  { %1756 = vmatpush3.bf16.msra.mxu0 %v1901_v0 }
 0x340   :  { %1757 = vmatprep.subr.bf16.mxu0 %v1902_v1 }
 0x343   :  { %1758 = vmatpush3.bf16.msra.mxu0 %v1902_v1 }
 0x344   :  { %1759 = vmatprep.subr.bf16.mxu0 %v1903_v2 }
 0x347   :  { %1760 = vmatpush3.bf16.msra.mxu0 %v1903_v2  ;;  %v1521_v2 = vld [vmem:[%s2402_s11] ss:$0 sm:$0xff] }
 0x348   :  { %1761 = vmatprep.subr.bf16.mxu0 %v1904_v3 }
 0x34b   :  { %1762 = vmatpush3.bf16.msra.mxu0 %v1904_v3 }
 0x3e1   :  { %v1725_v4 = vpop.f32.mrb[4].mxu0 }
 0x3e2   :  { %v525_v5 = vpop.f32.mrb[5].mxu0  ;;  %v542_v7 = vmul.f32 %v1725_v4, %v2160_v26 }
 0x3e3   :  { %v1726_v6 = vpop.f32.mrb[6].mxu0  ;;  %v540_v10 = vmul.f32 %v525_v5, %v2162_v27 }
 0x3e4   :  { %v543_v8 = vmul.f32 %v1726_v6, %v2164_v30  ;;  %v528_v9 = vpop.f32.mrb[7].mxu0 }
 0x3e5   :  { %v541_v12 = vmul.f32 %v528_v9, %v2166_v32 }
 0x3e6   :  { %v545_v13 = vpack.c.bf16 %v543_v8, %v542_v7  ;;  %v1522_v8 = vld [vmem:[%s2403_s12] ss:$0 sm:$0xff] }
 0x3e7   :  { %v544_v14 = vpack.c.bf16 %v541_v12, %v540_v10 }
 0x3e9   :  { %1763 = vmatprep.mubr.bf16.mxu0 %v544_v14 }
 0x3ea   :  { %1764 = vmatmul.mubr.bf16.vlgmr.msra.gmra.mrb[8].mxu0 %v545_v13 }
 0x4bd   :  { %v1765_v16 = vpop.f32.mrb[8].mxu0 }
 0x4be   :  { %v757_v17 = vpop.f32.mrb[9].mxu0  ;;  %v781_v21 = vadd.f32 %v1765_v16, %v1520_v15 }
 0x4bf   :  { %v779_v18 = vadd.f32 %v1520_v15, %v757_v17  ;;  %v1766_v19 = vpop.f32.mrb[10].mxu0 }
 0x4c0   :  { %v760_v20 = vpop.f32.mrb[11].mxu0  ;;  %v782_v24 = vadd.f32 %v1766_v19, %v1520_v15  ;;  %v785_v28 = vmax.f32 %v781_v21, 0.0 }
 0x4c1   :  { %v783_v22 = vmax.f32 %v779_v18, 0.0  ;;  %v780_v23 = vadd.f32 %v1520_v15, %v760_v20 }
 0x4c2   :  { %v786_v29 = vmax.f32 %v782_v24, 0.0  ;;  %v1907_v24 = vld [vmem:[%s2400_s14 + $0x10] sm:$0xff]  }
 0x4c3   :  { %v784_v25 = vmax.f32 %v780_v23, 0.0  ;;  %789 = vadd.xlane.f32.xlu1 %v783_v22  ;;  %v1906_v23 = vld [vmem:[%s2400_s14 + $0x8] sm:$0xff]  }
 0x4c5   :  { %791 = vadd.xlane.f32.xlu0 %v784_v25 }
 0x4c7   :  { %793 = vadd.xlane.f32.xlu1 %v785_v28 }
 0x4c9   :  { %795 = vadd.xlane.f32.xlu0 %v786_v29 }
 0x550   :  { %v790_v31 = vpop.xlane.xlu1 %789 }
 0x551   :  { %v797_v33 = vmul.f32 0.03125, %v790_v31  ;;  %v1912_v31 = vld [vmem:[%s2400_s14 + $0x38] sm:$0xff]  }
 0x552   :  { %v792_v34 = vpop.xlane.xlu0 %791 }
 0x553   :  { %v801_v35 = vsub.f32 %v783_v22, %v797_v33  ;;  %v798_v36 = vmul.f32 0.03125, %v792_v34  ;;  %v1905_v22 = vld [vmem:[%s2400_s14] sm:$0xff]   ;;  %v1914_v34 = vld [vmem:[%s2401_s13 + $0x8] sm:$0xff]  }
 0x554   :  { %v794_v37 = vpop.xlane.xlu1 %793  ;;  %v1913_v33 = vld [vmem:[%s2401_s13] sm:$0xff]  }
 0x555   :  { %v802_v38 = vsub.f32 %v784_v25, %v798_v36  ;;  %v799_v39 = vmul.f32 0.03125, %v794_v37  ;;  %v805_v40 = vmul.f32 %v2180_v59, %v801_v35  ;;  %v1908_v25 = vld [vmem:[%s2400_s14 + $0x18] sm:$0xff]   ;;  %v1915_v35 = vld [vmem:[%s2401_s13 + $0x10] sm:$0xff]   ;;  %v1917_v37 = vld [vmem:[%s2401_s13 + $0x20] sm:$0xff]  }
 0x556   :  { %v796_v41 = vpop.xlane.xlu0 %795  ;;  %v1916_v36 = vld [vmem:[%s2401_s13 + $0x18] sm:$0xff]  }
 0x557   :  { %v803_v42 = vsub.f32 %v785_v28, %v799_v39  ;;  %v800_v43 = vmul.f32 0.03125, %v796_v41  ;;  %v809_v44 = vmul.f32 %v805_v40, %v805_v40  ;;  %v806_v45 = vmul.f32 %v2180_v59, %v802_v38  ;;  %v1909_v28 = vld [vmem:[%s2400_s14 + $0x20] sm:$0xff]   ;;  %v1918_v38 = vld [vmem:[%s2401_s13 + $0x28] sm:$0xff]   ;;  %v1919_v39 = vld [vmem:[%s2401_s13 + $0x30] sm:$0xff]  }
 0x558   :  { %v1921_v41 = vld [vmem:[%s2404_s16] sm:$0xff]  }
 0x559   :  { %v804_v46 = vsub.f32 %v786_v29, %v800_v43  ;;  %813 = vadd.xlane.f32.xlu1 %v809_v44  ;;  %v810_v47 = vmul.f32 %v806_v45, %v806_v45  ;;  %v807_v48 = vmul.f32 %v2180_v59, %v803_v42  ;;  %v1911_v29 = vld [vmem:[%s2400_s14 + $0x30] sm:$0xff]   ;;  %v1922_v42 = vld [vmem:[%s2404_s16 + $0x8] sm:$0xff]   ;;  %1815 = vmatprep.subr.bf16.mxu0 %v1921_v41  ;;  %v1924_v44 = vld [vmem:[%s2404_s16 + $0x18] sm:$0xff]  }
 0x55a   :  { %1816 = vmatpush3.bf16.msra.mxu0 %v1921_v41  ;;  %v1923_v43 = vld [vmem:[%s2404_s16 + $0x10] sm:$0xff]  }
 0x55b   :  { %815 = vadd.xlane.f32.xlu0 %v810_v47  ;;  %v811_v49 = vmul.f32 %v807_v48, %v807_v48  ;;  %v808_v50 = vmul.f32 %v2180_v59, %v804_v46  ;;  %1817 = vmatprep.subr.bf16.mxu0 %v1922_v42  ;;  %v1926_v46 = vld [vmem:[%s2404_s16 + $0x28] sm:$0xff]  }
 0x55d   :  { %817 = vadd.xlane.f32.xlu1 %v811_v49  ;;  %v812_v51 = vmul.f32 %v808_v50, %v808_v50 }
 0x55e   :  { %1818 = vmatpush3.bf16.msra.mxu0 %v1922_v42 }
 0x55f   :  { %819 = vadd.xlane.f32.xlu0 %v812_v51  ;;  %1819 = vmatprep.subr.bf16.mxu0 %v1923_v43 }
 0x562   :  { %1820 = vmatpush3.bf16.msra.mxu0 %v1923_v43 }
 0x563   :  { %1821 = vmatprep.subr.bf16.mxu0 %v1924_v44 }
 0x566   :  { %1822 = vmatpush3.bf16.msra.mxu0 %v1924_v44 }
 0x5e6   :  { %v814_v52 = vpop.xlane.xlu1 %813 }
 0x5e7   :  { %v821_v53 = vmul.f32 0.03125, %v814_v52 }
 0x5e8   :  { %v816_v55 = vpop.xlane.xlu0 %815 }
 0x5e9   :  { %v825_v56 = vadd.f32 1e-05, %v821_v53  ;;  %v822_v57 = vmul.f32 0.03125, %v816_v55 }
 0x5ea   :  { %v818_v58 = vpop.xlane.xlu1 %817 }
 0x5eb   :  { %1945 = vrsqrt.f32 %v825_v56  ;;  %v826_v60 = vadd.f32 1e-05, %v822_v57  ;;  %v823_v61 = vmul.f32 0.03125, %v818_v58  ;;  %v1927_v58 = vld [vmem:[%s2404_s16 + $0x30] sm:$0xff]  }
 0x5ec   :  { %v820_v62 = vpop.xlane.xlu0 %819 }
 0x5ed   :  { %1947 = vrsqrt.f32 %v826_v60  ;;  %v827_v63 = vadd.f32 1e-05, %v823_v61  ;;  %v824_v0 = vmul.f32 0.03125, %v820_v62 }
 0x5ef   :  { %1949 = vrsqrt.f32 %v827_v63  ;;  %v828_v1 = vadd.f32 1e-05, %v824_v0 }
 0x5f1   :  { %1951 = vrsqrt.f32 %v828_v1 }
 0x5f5   :  { %v1946_v59 = vpop.eup %1945 }
 0x5f6   :  { %v833_v3 = vmul.f32 %v1946_v59, %v805_v40  ;;  %v1920_v40 = vld [vmem:[%s2401_s13 + $0x38] sm:$0xff]  }
 0x5f7   :  { %v1948_v4 = vpop.eup %1947 }
 0x5f8   :  { %v834_v5 = vmul.f32 %v1948_v4, %v806_v45  ;;  %v843_v6 = vmul.f32 %v1521_v2, %v833_v3  ;;  %v1925_v45 = vld [vmem:[%s2404_s16 + $0x20] sm:$0xff]  }
 0x5f9   :  { %v1950_v7 = vpop.eup %1949  ;;  %1823 = vmatprep.subr.bf16.mxu0 %v1925_v45 }
 0x5fa   :  { %v844_v9 = vmul.f32 %v1521_v2, %v834_v5  ;;  %v835_v10 = vmul.f32 %v1950_v7, %v807_v48  ;;  %v853_v13 = vadd.f32 %v1522_v8, %v843_v6  ;;  %1824 = vmatpush3.bf16.msra.mxu0 %v1925_v45 }
 0x5fb   :  { %v1952_v12 = vpop.eup %1951  ;;  %1825 = vmatprep.subr.bf16.mxu0 %v1926_v46 }
 0x5fc   :  { %v854_v14 = vadd.f32 %v1522_v8, %v844_v9  ;;  %v836_v15 = vmul.f32 %v1952_v12, %v808_v50  ;;  %v845_v16 = vmul.f32 %v1521_v2, %v835_v10  ;;  %v1931_v9 = vld [vmem:[%s2405_s18 + $0x10] sm:$0xff]   ;;  %v1932_v10 = vld [vmem:[%s2405_s18 + $0x18] sm:$0xff]   ;;  %v1933_v12 = vld [vmem:[%s2405_s18 + $0x20] sm:$0xff]  }
 0x5fe   :  { %v857_v17 = vpack.c.bf16 %v854_v14, %v853_v13  ;;  %v846_v18 = vmul.f32 %v1521_v2, %v836_v15  ;;  %v855_v19 = vadd.f32 %v1522_v8, %v845_v16  ;;  %1826 = vmatpush3.bf16.msra.mxu0 %v1926_v46  ;;  %v1934_v13 = vld [vmem:[%s2405_s18 + $0x28] sm:$0xff]   ;;  %v1935_v14 = vld [vmem:[%s2405_s18 + $0x30] sm:$0xff]   ;;  %v1936_v15 = vld [vmem:[%s2405_s18 + $0x38] sm:$0xff]  }
 0x5ff   :  { %1827 = vmatprep.subr.bf16.mxu0 %v1927_v58  ;;  %v1546_v16 = vld [vmem:[%s2408_s17] ss:$0 sm:$0xff] }
 0x600   :  { %1767 = vmatprep.subr.bf16.mxu1 %v857_v17  ;;  %v856_v20 = vadd.f32 %v1522_v8, %v846_v18  ;;  %v1930_v8 = vld [vmem:[%s2405_s18 + $0x8] sm:$0xff]  }
 0x601   :  { %1768 = vmatpush3.bf16.msra.mxu1 %v857_v17 }
 0x602   :  { %v858_v21 = vpack.c.bf16 %v856_v20, %v855_v19  ;;  %1828 = vmatpush3.bf16.msra.mxu0 %v1927_v58 }
 0x604   :  { %1769 = vmatprep.subr.bf16.mxu1 %v858_v21 }
 0x605   :  { %1770 = vmatpush3.bf16.msra.mxu1 %v858_v21 }
 0x606   :  { %1775 = vmatprep.subr.bf16.mxu1 %v1905_v22 }
 0x608   :  { %1772 = vmatmul.mubr.msk.bf16.vlgmr.msra.gmra.mrb[4].mxu1 %vm91_vm0, %v2112_v11  ;;  %v1910_v11 = vld [vmem:[%s2400_s14 + $0x28] sm:$0xff]  }
 0x609   :  { %1776 = vmatpush3.bf16.msra.mxu1 %v1905_v22  ;;  %1791 = vmatprep.mubr.bf16.mxu1 %v857_v17 }
 0x60a   :  { %1777 = vmatprep.subr.bf16.mxu1 %v1906_v23 }
 0x60d   :  { %1778 = vmatpush3.bf16.msra.mxu1 %v1906_v23 }
 0x60e   :  { %1779 = vmatprep.subr.bf16.mxu1 %v1907_v24 }
 0x611   :  { %1780 = vmatpush3.bf16.msra.mxu1 %v1907_v24 }
 0x612   :  { %1781 = vmatprep.subr.bf16.mxu1 %v1908_v25 }
 0x615   :  { %1782 = vmatpush3.bf16.msra.mxu1 %v1908_v25 }
 0x616   :  { %1783 = vmatprep.subr.bf16.mxu1 %v1909_v28 }
 0x619   :  { %1784 = vmatpush3.bf16.msra.mxu1 %v1909_v28 }
 0x61a   :  { %1785 = vmatprep.subr.bf16.mxu1 %v1910_v11 }
 0x61d   :  { %1786 = vmatpush3.bf16.msra.mxu1 %v1910_v11 }
 0x61e   :  { %1787 = vmatprep.subr.bf16.mxu1 %v1911_v29 }
 0x621   :  { %1788 = vmatpush3.bf16.msra.mxu1 %v1911_v29 }
 0x622   :  { %1789 = vmatprep.subr.bf16.mxu1 %v1912_v31 }
 0x625   :  { %1790 = vmatpush3.bf16.msra.mxu1 %v1912_v31 }
 0x626   :  { %1795 = vmatprep.subr.bf16.mxu1 %v1913_v33 }
 0x628   :  { %1792 = vmatmul.mubr.bf16.vlgmr.msra.gmra.mrb[8].mxu1 %v858_v21 }
 0x629   :  { %1796 = vmatpush3.bf16.msra.mxu1 %v1913_v33 }
 0x62a   :  { %1797 = vmatprep.subr.bf16.mxu1 %v1914_v34 }
 0x62d   :  { %1798 = vmatpush3.bf16.msra.mxu1 %v1914_v34  ;;  %v1555_v34 = vld [vmem:[%s2409_s19] ss:$0 sm:$0xff] }
 0x62e   :  { %1799 = vmatprep.subr.bf16.mxu1 %v1915_v35 }
 0x631   :  { %1800 = vmatpush3.bf16.msra.mxu1 %v1915_v35 }
 0x632   :  { %1801 = vmatprep.subr.bf16.mxu1 %v1916_v36 }
 0x635   :  { %1802 = vmatpush3.bf16.msra.mxu1 %v1916_v36 }
 0x636   :  { %1803 = vmatprep.subr.bf16.mxu1 %v1917_v37 }
 0x639   :  { %1804 = vmatpush3.bf16.msra.mxu1 %v1917_v37 }
 0x63a   :  { %1805 = vmatprep.subr.bf16.mxu1 %v1918_v38 }
 0x63d   :  { %1806 = vmatpush3.bf16.msra.mxu1 %v1918_v38 }
 0x63e   :  { %1807 = vmatprep.subr.bf16.mxu1 %v1919_v39 }
 0x641   :  { %1808 = vmatpush3.bf16.msra.mxu1 %v1919_v39 }
 0x642   :  { %1809 = vmatprep.subr.bf16.mxu1 %v1920_v40 }
 0x645   :  { %1810 = vmatpush3.bf16.msra.mxu1 %v1920_v40 }
 0x6db   :  { %v1773_v47 = vpop.f32.mrb[4].mxu1 }
 0x6dc   :  { %v893_v48 = vpop.f32.mrb[5].mxu1  ;;  %v910_v50 = vmul.f32 %v1773_v47, %v2160_v26  ;;  %v1928_v26 = vld [vmem:[%s2404_s16 + $0x38] sm:$0xff]  }
 0x6dd   :  { %v1774_v49 = vpop.f32.mrb[6].mxu1  ;;  %v908_v53 = vmul.f32 %v893_v48, %v2162_v27  ;;  %1829 = vmatprep.subr.bf16.mxu0 %v1928_v26  ;;  %v1929_v27 = vld [vmem:[%s2405_s18] sm:$0xff]  }
 0x6de   :  { %v911_v51 = vmul.f32 %v1774_v49, %v2164_v30  ;;  %v896_v52 = vpop.f32.mrb[7].mxu1  ;;  %1830 = vmatpush3.bf16.msra.mxu0 %v1928_v26  ;;  %v1541_v30 = vld [vmem:[%s2406_s15] ss:$0 sm:$0xff] }
 0x6df   :  { %v909_v55 = vmul.f32 %v896_v52, %v2166_v32  ;;  %1835 = vmatprep.subr.bf16.mxu0 %v1929_v27 }
 0x6e0   :  { %v913_v56 = vpack.c.bf16 %v911_v51, %v910_v50 }
 0x6e1   :  { %v912_v57 = vpack.c.bf16 %v909_v55, %v908_v53 }
 0x6e3   :  { %1811 = vmatprep.mubr.bf16.mxu1 %v912_v57 }
 0x6e4   :  { %1812 = vmatmul.mubr.bf16.vlgmr.msra.gmra.mrb[8].mxu1 %v913_v56 }
 0x7b7   :  { %v1813_v32 = vpop.f32.mrb[8].mxu1 }
 0x7b8   :  { %v1149_v60 = vadd.f32 %v1813_v32, %v1541_v30  ;;  %v1125_v61 = vpop.f32.mrb[9].mxu1 }
 0x7b9   :  { %v1147_v62 = vadd.f32 %v1541_v30, %v1125_v61  ;;  %v1814_v63 = vpop.f32.mrb[10].mxu1 }
 0x7ba   :  { %v1150_v0 = vadd.f32 %v1814_v63, %v1541_v30  ;;  %v1128_v1 = vpop.f32.mrb[11].mxu1  ;;  %v1153_v2 = vmax.f32 %v1149_v60, 0.0 }
 0x7bb   :  { %v1148_v59 = vadd.f32 %v1541_v30, %v1128_v1  ;;  %v1151_v4 = vmax.f32 %v1147_v62, 0.0 }
 0x7bc   :  { %v1154_v3 = vmax.f32 %v1150_v0, 0.0 }
 0x7bd   :  { %v1152_v5 = vmax.f32 %v1148_v59, 0.0 }
 0x7be   :  { %v1156_v6 = vpack.c.bf16 %v1154_v3, %v1153_v2 }
 0x7bf   :  { %v1155_v7 = vpack.c.bf16 %v1152_v5, %v1151_v4 }
 0x7c0   :  { %1578 = vst [vmem:[%s2407_s20 + $0x8] sm:$0xff] %v1156_v6  }
 0x7c1   :  { %1572 = vst [vmem:[%s2407_s20] sm:$0xff] %v1155_v7   ;;  %1831 = vmatprep.mubr.bf16.mxu0 %v1155_v7 }
 0x7c2   :  { %1832 = vmatmul.mubr.bf16.vlgmr.msra.gmra.mrb[12].mxu0 %v1156_v6 }
 0x7c3   :  { %1836 = vmatpush3.bf16.msra.mxu0 %v1929_v27 }
 0x7c4   :  { %1837 = vmatprep.subr.bf16.mxu0 %v1930_v8 }
 0x7c7   :  { %1838 = vmatpush3.bf16.msra.mxu0 %v1930_v8 }
 0x7c8   :  { %1839 = vmatprep.subr.bf16.mxu0 %v1931_v9 }
 0x7cb   :  { %1840 = vmatpush3.bf16.msra.mxu0 %v1931_v9 }
 0x7cc   :  { %1841 = vmatprep.subr.bf16.mxu0 %v1932_v10 }
 0x7cf   :  { %1842 = vmatpush3.bf16.msra.mxu0 %v1932_v10 }
 0x7d0   :  { %1843 = vmatprep.subr.bf16.mxu0 %v1933_v12 }
 0x7d3   :  { %1844 = vmatpush3.bf16.msra.mxu0 %v1933_v12 }
 0x7d4   :  { %1845 = vmatprep.subr.bf16.mxu0 %v1934_v13 }
 0x7d7   :  { %1846 = vmatpush3.bf16.msra.mxu0 %v1934_v13 }
 0x7d8   :  { %1847 = vmatprep.subr.bf16.mxu0 %v1935_v14 }
 0x7db   :  { %1848 = vmatpush3.bf16.msra.mxu0 %v1935_v14 }
 0x7dc   :  { %1849 = vmatprep.subr.bf16.mxu0 %v1936_v15 }
 0x7df   :  { %1850 = vmatpush3.bf16.msra.mxu0 %v1936_v15 }
 0x895   :  { %v1833_v17 = vpop.f32.mrb[12].mxu0 }
 0x896   :  { %v1289_v18 = vadd.f32 %v1833_v17, %v1546_v16  ;;  %v1280_v19 = vpop.f32.mrb[13].mxu0 }
 0x897   :  { %v1281_v20 = vadd.f32 %v1546_v16, %v1280_v19  ;;  %v1834_v21 = vpop.f32.mrb[14].mxu0 }
 0x898   :  { %v1292_v22 = vadd.f32 %v1834_v21, %v1546_v16  ;;  %v1283_v23 = vpop.f32.mrb[15].mxu0  ;;  %v1297_v25 = vmax.f32 %v1289_v18, 0.0 }
 0x899   :  { %v1284_v24 = vadd.f32 %v1546_v16, %v1283_v23  ;;  %v1295_v11 = vmax.f32 %v1281_v20, 0.0 }
 0x89a   :  { %v1298_v28 = vmax.f32 %v1292_v22, 0.0 }
 0x89b   :  { %v1296_v29 = vmax.f32 %v1284_v24, 0.0 }
 0x89c   :  { %v1300_v31 = vpack.c.bf16 %v1298_v28, %v1297_v25 }
 0x89d   :  { %v1299_v33 = vpack.c.bf16 %v1296_v29, %v1295_v11 }
 0x89f   :  { %1851 = vmatprep.mubr.bf16.mxu0 %v1299_v33 }
 0x8a0   :  { %1852 = vmatmul.mubr.bf16.vlgmr.msra.gmra.mrb[16].mxu0 %v1300_v31 }
 0x973   :  { %v1853_v35 = vpop.f32.mrb[16].mxu0 }
 0x974   :  { %v1406_v36 = vpop.f32.mrb[17].mxu0  ;;  %v1415_v40 = vadd.f32 %v1853_v35, %v1555_v34 }
 0x975   :  { %v1407_v37 = vadd.f32 %v1555_v34, %v1406_v36  ;;  %v1854_v38 = vpop.f32.mrb[18].mxu0 }
 0x976   :  { %v1409_v39 = vpop.f32.mrb[19].mxu0  ;;  %v1418_v43 = vadd.f32 %v1854_v38, %v1555_v34  ;;  %v1424_v45 = vsel %vm1421_vm2, %v1415_v40, -1e+30 }
 0x977   :  { %v1410_v41 = vadd.f32 %v1555_v34, %v1409_v39  ;;  %v1422_v42 = vsel %vm1421_vm2, %v1407_v37, -1e+30 }
 0x978   :  { %1426 = vmax.xlane.f32.xlu1 %v1422_v42  ;;  %v1425_v46 = vsel %vm1421_vm2, %v1418_v43, -1e+30 }
 0x979   :  { %v1423_v44 = vsel %vm1421_vm2, %v1410_v41, -1e+30 }
 0x97a   :  { %1428 = vmax.xlane.f32.xlu0 %v1423_v44 }
 0x97c   :  { %1430 = vmax.xlane.f32.xlu1 %v1424_v45 }
 0x97e   :  { %1432 = vmax.xlane.f32.xlu0 %v1425_v46 }
 0xa05   :  { %v1427_v47 = vpop.xlane.xlu1 %1426 }
 0xa06   :  { %v1434_v48 = vsub.f32 %v1422_v42, %v1427_v47 }
 0xa07   :  { %v1429_v49 = vpop.xlane.xlu0 %1428 }
 0xa08   :  { %v1438_v50 = vmul.f32 1.442695, %v1434_v48  ;;  %v1435_v51 = vsub.f32 %v1423_v44, %v1429_v49 }
 0xa09   :  { %v1431_v54 = vpop.xlane.xlu1 %1430 }
 0xa0a   :  { %1953 = vpow2.f32 %v1438_v50  ;;  %v1440_v52 = vmul.f32 1.442695, %v1435_v51  ;;  %v1436_v53 = vsub.f32 %v1424_v45, %v1431_v54 }
 0xa0b   :  { %v1433_v55 = vpop.xlane.xlu0 %1432 }
 0xa0c   :  { %1955 = vpow2.f32 %v1440_v52  ;;  %v1442_v56 = vmul.f32 1.442695, %v1436_v53  ;;  %v1437_v57 = vsub.f32 %v1425_v46, %v1433_v55 }
 0xa0e   :  { %1957 = vpow2.f32 %v1442_v56  ;;  %v1444_v58 = vmul.f32 1.442695, %v1437_v57 }
 0xa10   :  { %1959 = vpow2.f32 %v1444_v58 }
 0xa14   :  { %v1954_v26 = vpop.eup %1953 }
 0xa15   :  { %1446 = vadd.xlane.f32.xlu1 %v1954_v26 }
 0xa16   :  { %v1956_v27 = vpop.eup %1955 }
 0xa17   :  { %1448 = vadd.xlane.f32.xlu0 %v1956_v27 }
 0xa18   :  { %v1958_v30 = vpop.eup %1957 }
 0xa19   :  { %1450 = vadd.xlane.f32.xlu1 %v1958_v30 }
 0xa1a   :  { %v1960_v32 = vpop.eup %1959 }
 0xa1b   :  { %1452 = vadd.xlane.f32.xlu0 %v1960_v32 }
 0xaa2   :  { %v1447_v60 = vpop.xlane.xlu1 %1446 }
 0xaa3   :  { %1961 = vlog2.f32 %v1447_v60 }
 0xaa4   :  { %v1449_v61 = vpop.xlane.xlu0 %1448 }
 0xaa5   :  { %1963 = vlog2.f32 %v1449_v61 }
 0xaa6   :  { %v1451_v62 = vpop.xlane.xlu1 %1450 }
 0xaa7   :  { %1965 = vlog2.f32 %v1451_v62 }
 0xaa8   :  { %v1453_v63 = vpop.xlane.xlu0 %1452 }
 0xaa9   :  { %1967 = vlog2.f32 %v1453_v63 }
 0xaad   :  { %v1962_v0 = vpop.eup %1961 }
 0xaae   :  { %v1455_v1 = vmul.f32 0.6931472, %v1962_v0 }
 0xaaf   :  { %v1964_v59 = vpop.eup %1963 }
 0xab0   :  { %v1462_v2 = vsub.f32 %v1434_v48, %v1455_v1  ;;  %v1457_v3 = vmul.f32 0.6931472, %v1964_v59 }
 0xab1   :  { %v1966_v4 = vpop.eup %1965 }
 0xab2   :  { %1466 = vst [vmem:[%s2410_s21] sm:$0xff] %v1462_v2  ;;  %v1463_v5 = vsub.f32 %v1435_v51, %v1457_v3  ;;  %v1459_v6 = vmul.f32 0.6931472, %v1966_v4 }
 0xab3   :  { %v1968_v7 = vpop.eup %1967 }
 0xab4   :  { %1467 = vst [vmem:[%s2410_s21 + $0x8] sm:$0xff] %v1463_v5  ;;  %v1464_v8 = vsub.f32 %v1436_v53, %v1459_v6  ;;  %v1461_v9 = vmul.f32 0.6931472, %v1968_v7 }
 0xab6   :  { %1468 = vst [vmem:[%s2410_s21 + $0x10] sm:$0xff] %v1464_v8  ;;  %v1465_v10 = vsub.f32 %v1437_v57, %v1461_v9 }
 0xab8   :  { %1469 = vst [vmem:[%s2410_s21 + $0x18] sm:$0xff] %v1465_v10 }

</bundles_post_ra>
